<compile_context>
chip_gen: v5e
topology: v5e:2x2
jax: 0.10.0
libtpu: 0.0.40
codegen_flags: <defaults>
</compile_context>

<pallas_src>
import jax
import jax.numpy as jnp
from jax.experimental import pallas as pl
from jax.experimental.pallas import tpu as pltpu


# ---------------------------------------------------------------------------
# Fast path: nn.Identity.forward is semantically a pure pass-through.
# ---------------------------------------------------------------------------
def identity(x: jax.Array) -> jax.Array:
    """Zero-cost Identity.forward: returns x unchanged (no HBM traffic)."""
    return x


# ---------------------------------------------------------------------------
# Primary Pallas path: one HBM -> HBM async DMA (no grid, no VMEM staging).
# ---------------------------------------------------------------------------
def _dma_copy_kernel(x_hbm_ref, o_hbm_ref, sem):
    copy = pltpu.make_async_copy(x_hbm_ref, o_hbm_ref, sem)
    copy.start()
    copy.wait()


def identity_pallas_copy(x: jax.Array) -> jax.Array:
    """Identity materialized as a fresh buffer via a single HBM->HBM DMA.

    Works for any shape/dtype; sits at HBM roofline (one descriptor, 2N bytes).
    """
    if x.size == 0:
        return x
    nbytes = x.size * jnp.dtype(x.dtype).itemsize
    return pl.pallas_call(
        _dma_copy_kernel,
        out_shape=jax.ShapeDtypeStruct(x.shape, x.dtype),
        in_specs=[pl.BlockSpec(memory_space=pl.ANY)],
        out_specs=pl.BlockSpec(memory_space=pl.ANY),
        scratch_shapes=[pltpu.SemaphoreType.DMA],
        cost_estimate=pl.CostEstimate(
            flops=0, transcendentals=0, bytes_accessed=2 * nbytes
        ),
    )(x)


# ---------------------------------------------------------------------------
# Secondary path: tiled VMEM copy (kept for cases where a BlockSpec-pipelined
# copy is preferred), with generation-aware block sizing.
# ---------------------------------------------------------------------------
def _copy_kernel(x_ref, o_ref):
    o_ref[...] = x_ref[...]


_LANE = 128


def _sublane_quantum(dtype) -> int:
    """Packed-sublane alignment for the row tile (8 for 32-bit, 16 for bf16,
    32 for 8-bit)."""
    itemsize = jnp.dtype(dtype).itemsize
    if itemsize >= 4:
        return 8
    if itemsize == 2:
        return 16
    return 32


def _chip_tuning():
    """Generation-aware (block_bytes, vmem_limit_bytes, two_tensorcores).

    v7x: 3.2 TB/s HBM but 64 MiB VMEM -> ~8 MiB blocks, explicit 40 MiB limit,
         2 TCs so keep >= 2 grid steps.
    v6e: ~4 MiB blocks, 24 MiB limit.
    v5e (and unknown): conservative 2 MiB blocks inside the 16 MiB scoped default.
    """
    block_bytes = 2 * 1024 * 1024
    vmem_limit = 16 << 20
    two_cores = False
    try:
        kind = jax.devices()[0].device_kind.lower()
    except Exception:
        kind = ""
    if "v7" in kind:
        block_bytes = 8 * 1024 * 1024
        vmem_limit = 40 << 20
        two_cores = True
    elif "v6" in kind:
        block_bytes = 4 * 1024 * 1024
        vmem_limit = 24 << 20
    return block_bytes, vmem_limit, two_cores


def identity_pallas_copy_tiled(x: jax.Array) -> jax.Array:
    """Identity as a BlockSpec-pipelined VMEM copy (lane-dense 2-D tiling)."""
    orig_shape = x.shape
    if x.size == 0:
        return x

    n = x.size
    itemsize = jnp.dtype(x.dtype).itemsize
    quantum = _sublane_quantum(x.dtype)

    # Lane-dense 2-D view: last dim a large multiple of 128.
    ct = None
    for cand in (4096, 2048, 1024, 512, 256, _LANE):
        if n % cand == 0:
            ct = cand
            break
    if ct is None:
        # Awkward element count (not a multiple of 128): avoid masked
        # sub-128-lane partial stores entirely -- the HBM->HBM DMA path copies
        # any shape at roofline.
        return identity_pallas_copy(x)

    x2 = x.reshape(n // ct, ct)
    R, C = x2.shape

    block_bytes, vmem_limit, two_cores = _chip_tuning()

    # Row tile targeting ~block_bytes per block, aligned to the sublane quantum.
    rows_target = max(block_bytes // (C * itemsize), 1)
    tr = max((rows_target // quantum) * quantum, quantum)

    if two_cores and R >= 2 * quantum:
        # Cap the row tile so the grid has >= 2 steps and both v7x TCs run.
        half = (R + 1) // 2
        tr_cap = ((half + quantum - 1) // quantum) * quantum  # < R when R >= 2*quantum
        tr = min(tr, tr_cap)

    if tr >= R:
        tr = R  # full-extent row block is always legal.

    grid = (pl.cdiv(R, tr),)  # cdiv grid: partial trailing block is masked.
    spec = pl.BlockSpec((tr, C), lambda i: (i, 0))

    y2 = pl.pallas_call(
        _copy_kernel,
        out_shape=jax.ShapeDtypeStruct((R, C), x2.dtype),
        grid_spec=pltpu.PrefetchScalarGridSpec(
            num_scalar_prefetch=0,
            grid=grid,
            in_specs=[spec],
            out_specs=spec,
        ),
        compiler_params=pltpu.CompilerParams(
            dimension_semantics=("parallel",),
            vmem_limit_bytes=vmem_limit,
        ),
        cost_estimate=pl.CostEstimate(
            flops=0, transcendentals=0, bytes_accessed=2 * n * itemsize
        ),
    )(x2)

    return y2.reshape(orig_shape)


if __name__ == "__main__":
    key = jax.random.PRNGKey(0)
    k0, k1 = jax.random.split(key)

    # Small NCHW input consistent with typical usage of the module.
    x = jax.random.normal(k0, (2, 4, 16, 16), dtype=jnp.float32)
    # Ragged shape (element count not a multiple of 128) to exercise the
    # shape-agnostic DMA path / fallback.
    x_ragged = jax.random.normal(k1, (3, 5, 7), dtype=jnp.float32)

    # Fast path (the recommended Identity): pure pass-through.
    y_fast = identity(x)
    jax.block_until_ready(y_fast)
    assert y_fast.shape == x.shape and y_fast.dtype == x.dtype
    assert bool(jnp.all(y_fast == x))

    # Primary Pallas path: single HBM->HBM DMA copy.
    y_dma = identity_pallas_copy(x)
    jax.block_until_ready(y_dma)
    assert y_dma.shape == x.shape and y_dma.dtype == x.dtype
    assert bool(jnp.all(y_dma == x))

    y_dma_ragged = identity_pallas_copy(x_ragged)
    jax.block_until_ready(y_dma_ragged)
    assert y_dma_ragged.shape == x_ragged.shape
    assert bool(jnp.all(y_dma_ragged == x_ragged))

    # Secondary tiled VMEM-copy path (also delegates ragged sizes to the DMA path).
    y_tiled = identity_pallas_copy_tiled(x)
    jax.block_until_ready(y_tiled)
    assert y_tiled.shape == x.shape and y_tiled.dtype == x.dtype
    assert bool(jnp.all(y_tiled == x))

    y_tiled_ragged = identity_pallas_copy_tiled(x_ragged)
    jax.block_until_ready(y_tiled_ragged)
    assert bool(jnp.all(y_tiled_ragged == x_ragged))

    print("KERNEL_OK")
</pallas_src>

<mosaic_0001>
module attributes {stable_mosaic.version = 11 : i64} {
  func.func @_dma_copy_kernel(%arg0: memref<2x4x16x16xf32, #tpu.memory_space<any>>, %arg1: memref<2x4x16x16xf32, #tpu.memory_space<any>>, %arg2: memref<!tpu.dma_semaphore, #tpu.memory_space<semaphore_mem>>) attributes {dimension_semantics = [], scalar_prefetch = 0 : i64, scratch_operands = 1 : i64, tpu.core_type = #tpu.core_type<tc>} {
    tpu.enqueue_dma source(%arg0 : memref<2x4x16x16xf32, #tpu.memory_space<any>>) target(%arg1 : memref<2x4x16x16xf32, #tpu.memory_space<any>>) target_semaphore(%arg2 : memref<!tpu.dma_semaphore, #tpu.memory_space<semaphore_mem>>)
    tpu.wait_dma2 semaphore(%arg2 : memref<!tpu.dma_semaphore, #tpu.memory_space<semaphore_mem>>) src(%arg0 : memref<2x4x16x16xf32, #tpu.memory_space<any>>) dst(%arg1 : memref<2x4x16x16xf32, #tpu.memory_space<any>>)
    return
  }
}

</mosaic_0001>

<bundles_post_ra>
// kernel: tpu_custom_call.1
= control target key start
LH: loop header
LB: loop body
LE: loop exit
PB: predicated region body
PF: predicated region fallthrough
CT: control target
= control target key end

     0   :  { %s34_s12 = smov [#allocation2]   ;;  %s35_s13 = smov [#allocation3]   ;;  %s53_s0 = inlined_call_operand.hbm [shape: f32[2,4,16,16], index: 0, kind: input, shape index: {}]   ;;  %s54_s1 = inlined_call_operand.hbm [shape: f32[2,4,16,16], index: 1, kind: output, shape index: {}]  }
   0x1   :  { %s10_s8 = sshll.u32 %s53_s0, 4  ;;  %s12_s11 = sshll.u32 %s54_s1, 4  ;;  %s11_s8 = int_to_ptr.hbm [resolvable:$true] %s10_s8  ;;  %s13_s11 = int_to_ptr.hbm [resolvable:$true] %s12_s11 }
   0x2   :  { %s36_s14 = smov 0  }
   0x3   :  { %16 = dma.general %s11_s8, 2048, %s13_s11, %s34_s12, %s35_s13, [#allocation4], %s36_s14, 0  }
   0x4   :  { %32 = dma.done.wait [#allocation2], 2048 }
   0x5   :  { %33 = vsyncadd [#allocation2], 4294965248 }
   0x6   :  { %22 = vsyncmov [#allocation2] }
   0x9   :  { %s23_s15 = vpop.sfrf %22 }
   0xa   :  { %p28_p0 = scmp.ne.s32.totalorder %s23_s15, 0 }
   0xc   :  { %27 = shalt.err (%p28_p0)  }

</bundles_post_ra>
